<compile_context>
chip_gen: v6e
topology: v6e:2x2x1
jax: 0.10.0
libtpu: 0.0.40
codegen_flags: <defaults>
</compile_context>

<pallas_src>
import jax
import jax.numpy as jnp
from jax.experimental import pallas as pl
from jax.experimental.pallas import tpu as pltpu

COLS = 512                 # lane-dense last dim (multiple of 128)
SUBLANES = 8               # sublane granularity for the second-to-last dim
SMALL_N_FAST_PATH = 1 << 20  # below this many elements, plain XLA wins


def _fma_kernel(x_ref, w_ref, b_ref, o_ref):
    # x_ref / o_ref: (tile_r, COLS) tiles in VMEM; w_ref / b_ref: (1,) f32 in SMEM.
    w = w_ref[0]
    b = b_ref[0]
    o_ref[...] = (x_ref[...].astype(jnp.float32) * w + b).astype(o_ref.dtype)


def _default_block_bytes():
    """Per-block byte budget tuned per TPU generation (4 live buffers: in+out, 2x)."""
    try:
        kind = jax.devices()[0].device_kind.lower()
    except Exception:
        kind = ""
    if "v7" in kind:
        return 8 << 20   # 3.2 TB/s HBM: 8 MiB blocks -> 32 MiB live (64 MiB physical VMEM)
    if "v6" in kind:
        return 4 << 20   # 1.4 TB/s: 16 MiB live fits the 32 MiB scoped default
    return 2 << 20       # v5e & unknown: 8 MiB live fits the 16 MiB scoped default


def modelo_forward(x, weight, bias, *, tile_rows=None,
                   pallas_min_elems=SMALL_N_FAST_PATH):
    """Equivalent of nn.Linear(1, 1): y = x * w + b, preserving x's shape & dtype.

    x:      (..., 1) array (any leading batch dims, last dim = in_features = 1)
    weight: (1, 1)   PyTorch layout [out_features, in_features]
    bias:   (1,)
    """
    orig_shape = x.shape
    orig_dtype = x.dtype

    w_s = weight.reshape((1,)).astype(jnp.float32)
    b_s = bias.reshape((1,)).astype(jnp.float32)

    x_flat = jnp.ravel(x)
    n = x_flat.shape[0]

    if n == 0:                      # empty input guard
        return x

    # Small-N fast path: a pallas_call here is pure launch overhead.
    if n < pallas_min_elems:
        return (x.astype(jnp.float32) * w_s[0] + b_s[0]).astype(orig_dtype)

    itemsize = jnp.dtype(orig_dtype).itemsize

    # Lane-dense slab: (rows, COLS). Pad only to the next COLS multiple
    # (skipped when n already divides), grid handles the ragged row-block.
    rows = -(-n // COLS)
    padded = rows * COLS

    # Tile rows: default from the generation-specific block-byte budget,
    # rounded to the 8-sublane granularity, never larger than the slab.
    if tile_rows is None:
        tile_r = _default_block_bytes() // (COLS * itemsize)
    else:
        tile_r = int(tile_rows)
    tile_r = max(SUBLANES, (tile_r // SUBLANES) * SUBLANES)
    tile_r = min(tile_r, -(-rows // SUBLANES) * SUBLANES)

    # Keep >= 2 grid steps when there is enough work so both v7x TensorCores
    # get a share of the "parallel" axis.
    if rows > SUBLANES:
        half = -(-rows // 2)
        half = -(-half // SUBLANES) * SUBLANES
        tile_r = min(tile_r, half)
    tile_r = max(SUBLANES, tile_r)

    if padded != n:
        x_flat = jnp.pad(x_flat, (0, padded - n))
    x2d = x_flat.reshape(rows, COLS)

    grid = (pl.cdiv(rows, tile_r),)

    # 4 live VMEM buffers (in + out, double-buffered) plus headroom.
    block_b = tile_r * COLS * itemsize
    vmem_limit = int(min(64 << 20, max(16 << 20, 4 * block_b + (4 << 20))))

    out2d = pl.pallas_call(
        _fma_kernel,
        out_shape=jax.ShapeDtypeStruct((rows, COLS), orig_dtype),
        grid=grid,
        in_specs=[
            pl.BlockSpec((tile_r, COLS), lambda i: (i, 0)),
            pl.BlockSpec(memory_space=pltpu.MemorySpace.SMEM),
            pl.BlockSpec(memory_space=pltpu.MemorySpace.SMEM),
        ],
        out_specs=pl.BlockSpec((tile_r, COLS), lambda i: (i, 0)),
        compiler_params=pltpu.CompilerParams(
            dimension_semantics=("parallel",),
            vmem_limit_bytes=vmem_limit,
        ),
    )(x2d, w_s, b_s)

    out_flat = out2d.reshape(-1)
    if padded != n:
        out_flat = out_flat[:n]
    return out_flat.reshape(orig_shape)


if __name__ == "__main__":
    key = jax.random.PRNGKey(0)
    kx, kw, kb = jax.random.split(key, 3)

    # Small shapes consistent with nn.Linear(1, 1): batch=8, features=1.
    x = jax.random.normal(kx, (8, 1), dtype=jnp.float32)
    weight = jax.random.uniform(kw, (1, 1), dtype=jnp.float32, minval=-1.0, maxval=1.0)
    bias = jax.random.uniform(kb, (1,), dtype=jnp.float32, minval=-1.0, maxval=1.0)

    ref = x @ weight.T + bias

    # Force the Pallas path at this tiny size (the default wrapper would take
    # the small-N XLA fast path) so the kernel itself is exercised.
    out = modelo_forward(x, weight, bias, pallas_min_elems=0)
    out = jax.block_until_ready(out)
    assert out.shape == x.shape and out.dtype == x.dtype
    assert jnp.allclose(out, ref, atol=1e-6, rtol=1e-6)

    # Also exercise the small-N fast path (plain XLA).
    out_fast = jax.block_until_ready(modelo_forward(x, weight, bias))
    assert jnp.allclose(out_fast, ref, atol=1e-6, rtol=1e-6)

    print("KERNEL_OK")
</pallas_src>

<mosaic_0001>
module attributes {stable_mosaic.version = 11 : i64} {
  func.func @_fma_kernel(%arg0: i32, %arg1: memref<8x512xf32, #tpu.memory_space<vmem>>, %arg2: memref<1xf32, #tpu.memory_space<smem>>, %arg3: memref<1xf32, #tpu.memory_space<smem>>, %arg4: memref<8x512xf32, #tpu.memory_space<vmem>>) attributes {dimension_semantics = [#tpu.dimension_semantics<parallel>], iteration_bounds = array<i64: 1>, scalar_prefetch = 0 : i64, scratch_operands = 0 : i64, tpu.core_type = #tpu.core_type<tc>, window_params = [{transform_indices = @transform_0, window_bounds = array<i64: 8, 512>}, {transform_indices = @transform_1, window_bounds = array<i64: 1>}, {transform_indices = @transform_2, window_bounds = array<i64: 1>}, {transform_indices = @transform_3, window_bounds = array<i64: 8, 512>}]} {
    %c0 = arith.constant 0 : index
    %0 = memref.load %arg2[%c0] : memref<1xf32, #tpu.memory_space<smem>>
    %c0_0 = arith.constant 0 : index
    %1 = memref.load %arg3[%c0_0] : memref<1xf32, #tpu.memory_space<smem>>
    %c0_1 = arith.constant 0 : index
    %c0_2 = arith.constant 0 : index
    %2 = vector.load %arg1[%c0_1, %c0_2] : memref<8x512xf32, #tpu.memory_space<vmem>>, vector<8x512xf32>
    %3 = vector.broadcast %0 : f32 to vector<8x512xf32>
    %4 = arith.mulf %2, %3 : vector<8x512xf32>
    %5 = vector.broadcast %1 : f32 to vector<8x512xf32>
    %6 = arith.addf %4, %5 : vector<8x512xf32>
    %c0_3 = arith.constant 0 : index
    %c0_4 = arith.constant 0 : index
    %7 = vector.load %arg4[%c0_3, %c0_4] : memref<8x512xf32, #tpu.memory_space<vmem>>, vector<8x512xf32>
    tpu.vector_store %arg4[%c0_3, %c0_4], %6 {strides = array<i32>} : memref<8x512xf32, #tpu.memory_space<vmem>>, vector<8x512xf32>,
    return
  }
  func.func @transform_0(%arg0: i32) -> (i32, i32) {
    %c0_i32 = arith.constant 0 : i32
    %c0_i32_0 = arith.constant 0 : i32
    return %arg0, %c0_i32 : i32, i32
  }
  func.func @transform_1(%arg0: i32) -> i32 {
    %c0_i32 = arith.constant 0 : i32
    %c0_i32_0 = arith.constant 0 : i32
    return %c0_i32 : i32
  }
  func.func @transform_2(%arg0: i32) -> i32 {
    %c0_i32 = arith.constant 0 : i32
    %c0_i32_0 = arith.constant 0 : i32
    return %c0_i32 : i32
  }
  func.func @transform_3(%arg0: i32) -> (i32, i32) {
    %c0_i32 = arith.constant 0 : i32
    %c0_i32_0 = arith.constant 0 : i32
    return %arg0, %c0_i32 : i32, i32
  }
}

</mosaic_0001>

<bundles_post_ra>
// kernel: tpu_custom_call.1
= control target key start
LH: loop header
LB: loop body
LE: loop exit
PB: predicated region body
PF: predicated region fallthrough
CT: control target
= control target key end

     0   :  { %10 = vsyncpa [#allocation5], 0  ;;  %v45_v3 = vlaneseq  ;;  %s174_s0 = inlined_call_operand.vmem [shape: f32[1,512], index: 0, kind: input, shape index: {}]   ;;  %s175_s1 = inlined_call_operand.<no memory space> [shape: f32[1], index: 1, kind: input, shape index: {}]   ;;  %s176_s2 = inlined_call_operand.<no memory space> [shape: f32[1], index: 2, kind: input, shape index: {}]   ;;  %s177_s3 = inlined_call_operand.hbm [shape: f32[1,512], index: 3, kind: output, shape index: {}]  }
   0x1   :  { %v19_v0 = vld [vmem:[%s174_s0] sm:$0xf]  ;;  %v27_v1 = vstv %s175_s1  ;;  %v36_v2 = vstv %s176_s2  ;;  %v20_v5 = vld [vmem:[%s174_s0 + $0x4] sm:$0xf] }
   0x2   :  { %v28_v4 = vmul.f32 %v27_v1, %v19_v0  ;;  %v21_v6 = vld [vmem:[%s174_s0 + $0x8] sm:$0xf]  ;;  %v22_v7 = vld [vmem:[%s174_s0 + $0xc] sm:$0xf]  ;;  %vm139_vm0 = vcmp.lt.s32.totalorder %v45_v3, 512  ;;  %v29_v9 = vmul.f32 %v27_v1, %v20_v5 }
   0x3   :  { %v30_v10 = vmul.f32 %v27_v1, %v21_v6  ;;  %v31_v11 = vmul.f32 %v27_v1, %v22_v7  ;;  %v23_v12 = vld [vmem:[%s174_s0 + $0x10] sm:$0xf]  ;;  %v24_v13 = vld [vmem:[%s174_s0 + $0x14] sm:$0xf]  ;;  %v25_v17 = vld [vmem:[%s174_s0 + $0x18] sm:$0xf] }
   0x4   :  { %v37_v14 = vadd.f32 %v36_v2, %v28_v4  ;;  %v32_v15 = vmul.f32 %v27_v1, %v23_v12  ;;  %v33_v16 = vmul.f32 %v27_v1, %v24_v13  ;;  %v26_v18 = vld [vmem:[%s174_s0 + $0x1c] sm:$0xf]  ;;  %v38_v19 = vadd.f32 %v36_v2, %v29_v9 }
   0x5   :  { %v39_v20 = vadd.f32 %v36_v2, %v30_v10  ;;  %v40_v21 = vadd.f32 %v36_v2, %v31_v11  ;;  %v34_v22 = vmul.f32 %v27_v1, %v25_v17  ;;  %v35_v25 = vmul.f32 %v27_v1, %v26_v18 }
   0x6   :  { %49 = vst.msk [vmem:[#allocation4] sm:$0xf] %vm139_vm0, %v37_v14  ;;  %v41_v23 = vadd.f32 %v36_v2, %v32_v15  ;;  %v42_v24 = vadd.f32 %v36_v2, %v33_v16  ;;  %50 = vst.msk [vmem:[#allocation4 + $0x4] sm:$0xf] %vm139_vm0, %v38_v19 }
   0x7   :  { %51 = vst.msk [vmem:[#allocation4 + $0x8] sm:$0xf] %vm139_vm0, %v39_v20  ;;  %52 = vst.msk [vmem:[#allocation4 + $0xc] sm:$0xf] %vm139_vm0, %v40_v21  ;;  %v43_v26 = vadd.f32 %v36_v2, %v34_v22  ;;  %v44_v27 = vadd.f32 %v36_v2, %v35_v25 }
   0x8   :  { %53 = vst.msk [vmem:[#allocation4 + $0x10] sm:$0xf] %vm139_vm0, %v41_v23  ;;  %54 = vst.msk [vmem:[#allocation4 + $0x14] sm:$0xf] %vm139_vm0, %v42_v24 }
   0x9   :  { %55 = vst.msk [vmem:[#allocation4 + $0x18] sm:$0xf] %vm139_vm0, %v43_v26  ;;  %56 = vst.msk [vmem:[#allocation4 + $0x1c] sm:$0xf] %vm139_vm0, %v44_v27 }
   0xa   :  { %61 = vsyncadd [#allocation5], 448  ;;  %s98_s0 = smov [#allocation4]  }
   0xb   :  { %s62_s30 = sshll.u32 %s98_s0, 4  ;;  %s63_s30 = int_to_ptr.vmem [resolvable:$true] %s62_s30 }
   0xc   :  { %s76_s4 = scalar_lea.vmem %s63_s30, 64  ;;  %s80_s5 = scalar_lea.vmem %s63_s30, 512 }
   0xd   :  { %p77_p0 = scmp.ne.s32.totalorder %s63_s30, %s76_s4  ;;  %p81_p1 = scmp.lt.s32.totalorder %s63_s30, %s63_s30 }
   0xe   :  { %p82_p2 = scmp.lt.s32.totalorder %s80_s5, %s76_s4 }
  0x10   :  { %p83_p3 = por %p82_p2, %p81_p1 }
  0x12   :  { %p84_p4 = pnand %p83_p3, %p77_p0 }
  0x14   :  { %87 = shalt.err (!%p84_p4)
}
  0x15   :  { %s99_s6 = smov 64   ;;  %s100_s7 = smov 4  }
  0x16   :  { %68 = dma.vmem_to_hbm [thread:$0]  %s63_s30, 64, %s177_s3, [#allocation5], %s99_s6, %s99_s6, %s100_s7  }
  0x17   :  { %96 = dma.done.wait [#allocation5], 512  }
  0x18   :  { %97 = vsyncadd [#allocation5], 4294966784 }
  0x19   :  { %72 = vsyncpa [#allocation5], 1 }

</bundles_post_ra>
